<compile_context>
chip_gen: v6e
topology: v6e:2x2x1
jax: 0.10.0
libtpu: 0.0.40
codegen_flags: <defaults>
</compile_context>

<pallas_src>
import functools

import jax
import jax.numpy as jnp
from jax.experimental import pallas as pl
from jax.experimental.pallas import tpu as pltpu


def _round_up(x: int, m: int) -> int:
    return (x + m - 1) // m * m


def _cdiv(a: int, b: int) -> int:
    return -(-a // b)


def _mlp_kernel(n_layers, *refs):
    """Fused MLP: refs = (x, w0, b0, w1, b1, ..., w_{L-1}, b_{L-1}, out)."""
    x_ref = refs[0]
    out_ref = refs[-1]
    param_refs = refs[1:-1]

    h = x_ref[...]  # f32 activations
    for i in range(n_layers):
        w = param_refs[2 * i][...]        # bf16, resident in VMEM
        b = param_refs[2 * i + 1][...]    # f32 (1, out_pad)
        acc = jnp.dot(h.astype(w.dtype), w,
                      preferred_element_type=jnp.float32) + b
        # ReLU after EVERY layer (faithful to the always-true branch in the
        # original PyTorch forward).
        h = jnp.maximum(acc, 0.0)
    out_ref[...] = h.astype(out_ref.dtype)


def pad_params(params):
    """Zero-pad + cast weights to bf16 once, outside the kernel.

    Layer 0's input dim is padded only to a multiple of 8 (it must match the
    streamed x slab); every other in/out dim is padded to a multiple of 128 so
    all MXU tiles and HBM stores stay lane-dense.  Zero padding is
    semantics-preserving (padded x columns, W rows/cols and b entries are 0,
    and ReLU(0) = 0).
    """
    padded = []
    prev_out_pad = None
    for idx, (w, b) in enumerate(params):
        d_in, d_out = w.shape
        if idx == 0:
            pi = max(8, _round_up(d_in, 8))
        else:
            pi = prev_out_pad if prev_out_pad is not None else _round_up(d_in, 128)
        po = _round_up(d_out, 128)
        wp = jnp.pad(w, ((0, pi - d_in), (0, po - d_out))).astype(jnp.bfloat16)
        bp = jnp.pad(b, ((0, 0), (0, po - d_out))).astype(jnp.float32)
        padded.append((wp, bp))
        prev_out_pad = po
    return padded


def _choose_batch_tiling(batch: int):
    """Pick (tile_b, n_steps) that minimizes row padding.

    batch <= 256: one grid step (latency-bound, nothing to gain from tiling).
    batch  > 256: >= 2 (even) steps so both v7x TensorCores get work, tiles up
    to ~1024 rows (VMEM use is tiny), tile derived from batch so row padding
    is < 8 rows per step instead of up to a full fixed tile.
    """
    if batch <= 256:
        return max(8, _round_up(batch, 8)), 1
    max_tile = 1024
    n_steps = max(2, _cdiv(batch, max_tile))
    if n_steps % 2:
        n_steps += 1
    tile_b = _round_up(_cdiv(batch, n_steps), 8)
    n_steps = _cdiv(batch, tile_b)
    return tile_b, n_steps


def dqn_forward(x, padded_params, output_dim):
    """Run the DQN MLP forward pass in a single fused Pallas kernel.

    Args:
      x: (batch, input_dim) float32 array (unpadded).
      padded_params: output of pad_params() - [(W_bf16, b_f32), ...].
      output_dim: true (unpadded) output dimension; output sliced to it.
    Returns:
      (batch, output_dim) float32 q-values.
    """
    batch, d_in = x.shape
    d_in_pad = padded_params[0][0].shape[0]
    d_out_pad = padded_params[-1][1].shape[1]
    n_layers = len(padded_params)

    # Only pad columns of x (single cheap pad op over a narrow slab); rows are
    # handled implicitly by the grid (OOB output rows are masked on write).
    if d_in_pad != d_in:
        x = jnp.pad(x, ((0, 0), (0, d_in_pad - d_in)))

    tile_b, n_steps = _choose_batch_tiling(batch)
    grid = (n_steps,)

    flat = []
    for w, b in padded_params:
        flat.append(w)
        flat.append(b)

    kernel = functools.partial(_mlp_kernel, n_layers)

    def run(single_buffer_weights: bool):
        in_specs = [pl.BlockSpec((tile_b, d_in_pad), lambda i: (i, 0))]
        for arr in flat:
            if single_buffer_weights:
                # Constant index_map -> single resident copy; Buffered(1)
                # avoids the default double-buffer allocation + 2nd prefetch.
                in_specs.append(
                    pl.BlockSpec(arr.shape, lambda i: (0, 0),
                                 pipeline_mode=pl.Buffered(1)))
            else:
                in_specs.append(pl.BlockSpec(arr.shape, lambda i: (0, 0)))
        return pl.pallas_call(
            kernel,
            out_shape=jax.ShapeDtypeStruct((batch, d_out_pad), jnp.float32),
            grid=grid,
            in_specs=in_specs,
            out_specs=pl.BlockSpec((tile_b, d_out_pad), lambda i: (i, 0)),
            compiler_params=pltpu.CompilerParams(
                dimension_semantics=("parallel",),
            ),
        )(x, *flat)

    try:
        out_pad = run(True)
    except Exception:
        # Fallback if pl.Buffered(1) single-buffering is not supported by this
        # Pallas build; identical semantics, default double-buffered weights.
        out_pad = run(False)

    return out_pad[:, :output_dim]


def init_dqn_params(key, input_dim, output_dim, nb_hidden, hidden_size):
    """Deterministic PyTorch-style (uniform +/- 1/sqrt(fan_in)) init.

    Mirrors DQN.create_layers:
      Linear(input_dim, hidden), Linear(hidden, hidden) x (nb_hidden - 1),
      Linear(hidden, output_dim)  -> nb_hidden + 1 layers.
    Weights are stored transposed, (in_dim, out_dim), so y = x @ W + b.
    """
    params = []
    last_dim = input_dim
    for layer in range(nb_hidden + 1):
        out_d = output_dim if layer == nb_hidden else hidden_size
        key, kw, kb = jax.random.split(key, 3)
        bound = 1.0 / jnp.sqrt(jnp.float32(last_dim))
        w = jax.random.uniform(
            kw, (last_dim, out_d), jnp.float32, minval=-bound, maxval=bound)
        b = jax.random.uniform(
            kb, (1, out_d), jnp.float32, minval=-bound, maxval=bound)
        params.append((w, b))
        last_dim = hidden_size
    return params


def dqn_forward_ref(x, params):
    """Pure-JAX f32 reference (unpadded). ReLU after every layer, matching
    the original module's (always-true) branch."""
    h = x
    for w, b in params:
        h = jnp.maximum(jnp.dot(h, w) + b, 0.0)
    return h


if __name__ == "__main__":
    # state = (Lt, It, t) -> input_dim = 3
    input_dim = 3
    output_dim = 8
    nb_hidden = 2
    hidden_size = 32
    batch = 8

    key = jax.random.PRNGKey(0)
    key, kx, kx2 = jax.random.split(key, 3)
    x = jax.random.normal(kx, (batch, input_dim), jnp.float32)

    params = init_dqn_params(key, input_dim, output_dim, nb_hidden, hidden_size)
    padded_params = pad_params(params)  # pad + bf16-cast once, outside kernel

    # bf16 MXU operands with f32 accumulation -> loosened tolerance vs f32 ref.
    ATOL = RTOL = 2e-2

    # Small-batch (single grid step, latency-bound path).
    q_values = jax.block_until_ready(dqn_forward(x, padded_params, output_dim))
    ref = dqn_forward_ref(x, params)
    assert q_values.shape == (batch, output_dim)
    assert jnp.allclose(q_values, ref, atol=ATOL, rtol=RTOL)

    # Larger batch (exercises adaptive multi-step tiling + implicit row pad).
    batch2 = 300
    x2 = jax.random.normal(kx2, (batch2, input_dim), jnp.float32)
    q2 = jax.block_until_ready(dqn_forward(x2, padded_params, output_dim))
    ref2 = dqn_forward_ref(x2, params)
    assert q2.shape == (batch2, output_dim)
    assert jnp.allclose(q2, ref2, atol=ATOL, rtol=RTOL)

    print("KERNEL_OK")
</pallas_src>

<mosaic_0001>
module attributes {stable_mosaic.version = 11 : i64} {
  func.func @_mlp_kernel(%arg0: i32, %arg1: memref<8x8xf32, #tpu.memory_space<vmem>>, %arg2: memref<8x128xbf16, #tpu.memory_space<vmem>>, %arg3: memref<1x128xf32, #tpu.memory_space<vmem>>, %arg4: memref<128x128xbf16, #tpu.memory_space<vmem>>, %arg5: memref<1x128xf32, #tpu.memory_space<vmem>>, %arg6: memref<128x128xbf16, #tpu.memory_space<vmem>>, %arg7: memref<1x128xf32, #tpu.memory_space<vmem>>, %arg8: memref<8x128xf32, #tpu.memory_space<vmem>>) attributes {dimension_semantics = [#tpu.dimension_semantics<parallel>], iteration_bounds = array<i64: 1>, scalar_prefetch = 0 : i64, scratch_operands = 0 : i64, tpu.core_type = #tpu.core_type<tc>, window_params = [{transform_indices = @transform_0, window_bounds = array<i64: 8, 8>}, {pipeline_mode = #tpu.pipeline_mode<synchronous>, transform_indices = @transform_1, window_bounds = array<i64: 8, 128>}, {pipeline_mode = #tpu.pipeline_mode<synchronous>, transform_indices = @transform_2, window_bounds = array<i64: 1, 128>}, {pipeline_mode = #tpu.pipeline_mode<synchronous>, transform_indices = @transform_3, window_bounds = array<i64: 128, 128>}, {pipeline_mode = #tpu.pipeline_mode<synchronous>, transform_indices = @transform_4, window_bounds = array<i64: 1, 128>}, {pipeline_mode = #tpu.pipeline_mode<synchronous>, transform_indices = @transform_5, window_bounds = array<i64: 128, 128>}, {pipeline_mode = #tpu.pipeline_mode<synchronous>, transform_indices = @transform_6, window_bounds = array<i64: 1, 128>}, {transform_indices = @transform_7, window_bounds = array<i64: 8, 128>}]} {
    %c0 = arith.constant 0 : index
    %c0_0 = arith.constant 0 : index
    %0 = vector.load %arg1[%c0, %c0_0] : memref<8x8xf32, #tpu.memory_space<vmem>>, vector<8x8xf32>
    %c0_1 = arith.constant 0 : index
    %c0_2 = arith.constant 0 : index
    %1 = vector.load %arg2[%c0_1, %c0_2] : memref<8x128xbf16, #tpu.memory_space<vmem>>, vector<8x128xbf16>
    %c0_3 = arith.constant 0 : index
    %c0_4 = arith.constant 0 : index
    %2 = vector.load %arg3[%c0_3, %c0_4] : memref<1x128xf32, #tpu.memory_space<vmem>>, vector<1x128xf32>
    %3 = arith.truncf %0 : vector<8x8xf32> to vector<8x8xbf16>
    %cst = arith.constant dense<0.000000e+00> : vector<8x128xf32>
    %4 = tpu.matmul %3, %1, %cst {dimension_numbers = #tpu.dot_dimension_numbers<[1], [0], [0], [1], [0, 0, 1, 1], [], []>} : vector<8x8xbf16>, vector<8x128xbf16>, vector<8x128xf32> -> vector<8x128xf32>
    %5 = vector.broadcast %2 : vector<1x128xf32> to vector<8x128xf32>
    %6 = arith.addf %4, %5 : vector<8x128xf32>
    %cst_5 = arith.constant 0.000000e+00 : f32
    %7 = vector.broadcast %cst_5 : f32 to vector<8x128xf32>
    %8 = arith.maximumf %6, %7 : vector<8x128xf32>
    %c0_6 = arith.constant 0 : index
    %c0_7 = arith.constant 0 : index
    %9 = vector.load %arg4[%c0_6, %c0_7] : memref<128x128xbf16, #tpu.memory_space<vmem>>, vector<128x128xbf16>
    %c0_8 = arith.constant 0 : index
    %c0_9 = arith.constant 0 : index
    %10 = vector.load %arg5[%c0_8, %c0_9] : memref<1x128xf32, #tpu.memory_space<vmem>>, vector<1x128xf32>
    %11 = arith.truncf %8 : vector<8x128xf32> to vector<8x128xbf16>
    %cst_10 = arith.constant dense<0.000000e+00> : vector<8x128xf32>
    %12 = tpu.matmul %11, %9, %cst_10 {dimension_numbers = #tpu.dot_dimension_numbers<[1], [0], [0], [1], [0, 0, 1, 1], [], []>} : vector<8x128xbf16>, vector<128x128xbf16>, vector<8x128xf32> -> vector<8x128xf32>
    %13 = vector.broadcast %10 : vector<1x128xf32> to vector<8x128xf32>
    %14 = arith.addf %12, %13 : vector<8x128xf32>
    %cst_11 = arith.constant 0.000000e+00 : f32
    %15 = vector.broadcast %cst_11 : f32 to vector<8x128xf32>
    %16 = arith.maximumf %14, %15 : vector<8x128xf32>
    %c0_12 = arith.constant 0 : index
    %c0_13 = arith.constant 0 : index
    %17 = vector.load %arg6[%c0_12, %c0_13] : memref<128x128xbf16, #tpu.memory_space<vmem>>, vector<128x128xbf16>
    %c0_14 = arith.constant 0 : index
    %c0_15 = arith.constant 0 : index
    %18 = vector.load %arg7[%c0_14, %c0_15] : memref<1x128xf32, #tpu.memory_space<vmem>>, vector<1x128xf32>
    %19 = arith.truncf %16 : vector<8x128xf32> to vector<8x128xbf16>
    %cst_16 = arith.constant dense<0.000000e+00> : vector<8x128xf32>
    %20 = tpu.matmul %19, %17, %cst_16 {dimension_numbers = #tpu.dot_dimension_numbers<[1], [0], [0], [1], [0, 0, 1, 1], [], []>} : vector<8x128xbf16>, vector<128x128xbf16>, vector<8x128xf32> -> vector<8x128xf32>
    %21 = vector.broadcast %18 : vector<1x128xf32> to vector<8x128xf32>
    %22 = arith.addf %20, %21 : vector<8x128xf32>
    %cst_17 = arith.constant 0.000000e+00 : f32
    %23 = vector.broadcast %cst_17 : f32 to vector<8x128xf32>
    %24 = arith.maximumf %22, %23 : vector<8x128xf32>
    %c0_18 = arith.constant 0 : index
    %c0_19 = arith.constant 0 : index
    %25 = vector.load %arg8[%c0_18, %c0_19] : memref<8x128xf32, #tpu.memory_space<vmem>>, vector<8x128xf32>
    tpu.vector_store %arg8[%c0_18, %c0_19], %24 {strides = array<i32>} : memref<8x128xf32, #tpu.memory_space<vmem>>, vector<8x128xf32>,
    return
  }
  func.func @transform_0(%arg0: i32) -> (i32, i32) {
    %c0_i32 = arith.constant 0 : i32
    %c0_i32_0 = arith.constant 0 : i32
    return %arg0, %c0_i32 : i32, i32
  }
  func.func @transform_1(%arg0: i32) -> (i32, i32) {
    %c0_i32 = arith.constant 0 : i32
    %c0_i32_0 = arith.constant 0 : i32
    %c0_i32_1 = arith.constant 0 : i32
    return %c0_i32, %c0_i32_0 : i32, i32
  }
  func.func @transform_2(%arg0: i32) -> (i32, i32) {
    %c0_i32 = arith.constant 0 : i32
    %c0_i32_0 = arith.constant 0 : i32
    %c0_i32_1 = arith.constant 0 : i32
    return %c0_i32, %c0_i32_0 : i32, i32
  }
  func.func @transform_3(%arg0: i32) -> (i32, i32) {
    %c0_i32 = arith.constant 0 : i32
    %c0_i32_0 = arith.constant 0 : i32
    %c0_i32_1 = arith.constant 0 : i32
    return %c0_i32, %c0_i32_0 : i32, i32
  }
  func.func @transform_4(%arg0: i32) -> (i32, i32) {
    %c0_i32 = arith.constant 0 : i32
    %c0_i32_0 = arith.constant 0 : i32
    %c0_i32_1 = arith.constant 0 : i32
    return %c0_i32, %c0_i32_0 : i32, i32
  }
  func.func @transform_5(%arg0: i32) -> (i32, i32) {
    %c0_i32 = arith.constant 0 : i32
    %c0_i32_0 = arith.constant 0 : i32
    %c0_i32_1 = arith.constant 0 : i32
    return %c0_i32, %c0_i32_0 : i32, i32
  }
  func.func @transform_6(%arg0: i32) -> (i32, i32) {
    %c0_i32 = arith.constant 0 : i32
    %c0_i32_0 = arith.constant 0 : i32
    %c0_i32_1 = arith.constant 0 : i32
    return %c0_i32, %c0_i32_0 : i32, i32
  }
  func.func @transform_7(%arg0: i32) -> (i32, i32) {
    %c0_i32 = arith.constant 0 : i32
    %c0_i32_0 = arith.constant 0 : i32
    return %arg0, %c0_i32 : i32, i32
  }
}

module attributes {stable_mosaic.version = 11 : i64} {
  func.func @_mlp_kernel(%arg0: i32, %arg1: memref<8x8xf32, #tpu.memory_space<vmem>>, %arg2: memref<8x128xbf16, #tpu.memory_space<vmem>>, %arg3: memref<1x128xf32, #tpu.memory_space<vmem>>, %arg4: memref<128x128xbf16, #tpu.memory_space<vmem>>, %arg5: memref<1x128xf32, #tpu.memory_space<vmem>>, %arg6: memref<128x128xbf16, #tpu.memory_space<vmem>>, %arg7: memref<1x128xf32, #tpu.memory_space<vmem>>, %arg8: memref<8x128xf32, #tpu.memory_space<vmem>>) attributes {dimension_semantics = [#tpu.dimension_semantics<parallel>], iteration_bounds = array<i64: 1>, scalar_prefetch = 0 : i64, scratch_operands = 0 : i64, tpu.core_type = #tpu.core_type<tc>, window_params = [{transform_indices = @transform_0, window_bounds = array<i64: 8, 8>}, {pipeline_mode = #tpu.pipeline_mode<synchronous>, transform_indices = @transform_1, window_bounds = array<i64: 8, 128>}, {pipeline_mode = #tpu.pipeline_mode<synchronous>, transform_indices = @transform_2, window_bounds = array<i64: 1, 128>}, {pipeline_mode = #tpu.pipeline_mode<synchronous>, transform_indices = @transform_3, window_bounds = array<i64: 128, 128>}, {pipeline_mode = #tpu.pipeline_mode<synchronous>, transform_indices = @transform_4, window_bounds = array<i64: 1, 128>}, {pipeline_mode = #tpu.pipeline_mode<synchronous>, transform_indices = @transform_5, window_bounds = array<i64: 128, 128>}, {pipeline_mode = #tpu.pipeline_mode<synchronous>, transform_indices = @transform_6, window_bounds = array<i64: 1, 128>}, {transform_indices = @transform_7, window_bounds = array<i64: 8, 128>}]} {
    %c0 = arith.constant 0 : index
    %c0_0 = arith.constant 0 : index
    %0 = vector.load %arg1[%c0, %c0_0] : memref<8x8xf32, #tpu.memory_space<vmem>>, vector<8x8xf32>
    %c0_1 = arith.constant 0 : index
    %c0_2 = arith.constant 0 : index
    %1 = vector.load %arg2[%c0_1, %c0_2] : memref<8x128xbf16, #tpu.memory_space<vmem>>, vector<8x128xbf16>
    %c0_3 = arith.constant 0 : index
    %c0_4 = arith.constant 0 : index
    %2 = vector.load %arg3[%c0_3, %c0_4] : memref<1x128xf32, #tpu.memory_space<vmem>>, vector<1x128xf32>
    %3 = arith.truncf %0 : vector<8x8xf32> to vector<8x8xbf16>
    %cst = arith.constant dense<0.000000e+00> : vector<8x128xf32>
    %4 = tpu.matmul %3, %1, %cst {dimension_numbers = #tpu.dot_dimension_numbers<[1], [0], [0], [1], [0, 0, 1, 1], [], []>} : vector<8x8xbf16>, vector<8x128xbf16>, vector<8x128xf32> -> vector<8x128xf32>
    %5 = vector.broadcast %2 : vector<1x128xf32> to vector<8x128xf32>
    %6 = arith.addf %4, %5 : vector<8x128xf32>
    %cst_5 = arith.constant 0.000000e+00 : f32
    %7 = vector.broadcast %cst_5 : f32 to vector<8x128xf32>
    %8 = arith.maximumf %6, %7 : vector<8x128xf32>
    %c0_6 = arith.constant 0 : index
    %c0_7 = arith.constant 0 : index
    %9 = vector.load %arg4[%c0_6, %c0_7] : memref<128x128xbf16, #tpu.memory_space<vmem>>, vector<128x128xbf16>
    %c0_8 = arith.constant 0 : index
    %c0_9 = arith.constant 0 : index
    %10 = vector.load %arg5[%c0_8, %c0_9] : memref<1x128xf32, #tpu.memory_space<vmem>>, vector<1x128xf32>
    %11 = arith.truncf %8 : vector<8x128xf32> to vector<8x128xbf16>
    %cst_10 = arith.constant dense<0.000000e+00> : vector<8x128xf32>
    %12 = tpu.matmul %11, %9, %cst_10 {dimension_numbers = #tpu.dot_dimension_numbers<[1], [0], [0], [1], [0, 0, 1, 1], [], []>} : vector<8x128xbf16>, vector<128x128xbf16>, vector<8x128xf32> -> vector<8x128xf32>
    %13 = vector.broadcast %10 : vector<1x128xf32> to vector<8x128xf32>
    %14 = arith.addf %12, %13 : vector<8x128xf32>
    %cst_11 = arith.constant 0.000000e+00 : f32
    %15 = vector.broadcast %cst_11 : f32 to vector<8x128xf32>
    %16 = arith.maximumf %14, %15 : vector<8x128xf32>
    %c0_12 = arith.constant 0 : index
    %c0_13 = arith.constant 0 : index
    %17 = vector.load %arg6[%c0_12, %c0_13] : memref<128x128xbf16, #tpu.memory_space<vmem>>, vector<128x128xbf16>
    %c0_14 = arith.constant 0 : index
    %c0_15 = arith.constant 0 : index
    %18 = vector.load %arg7[%c0_14, %c0_15] : memref<1x128xf32, #tpu.memory_space<vmem>>, vector<1x128xf32>
    %19 = arith.truncf %16 : vector<8x128xf32> to vector<8x128xbf16>
    %cst_16 = arith.constant dense<0.000000e+00> : vector<8x128xf32>
    %20 = tpu.matmul %19, %17, %cst_16 {dimension_numbers = #tpu.dot_dimension_numbers<[1], [0], [0], [1], [0, 0, 1, 1], [], []>} : vector<8x128xbf16>, vector<128x128xbf16>, vector<8x128xf32> -> vector<8x128xf32>
    %21 = vector.broadcast %18 : vector<1x128xf32> to vector<8x128xf32>
    %22 = arith.addf %20, %21 : vector<8x128xf32>
    %cst_17 = arith.constant 0.000000e+00 : f32
    %23 = vector.broadcast %cst_17 : f32 to vector<8x128xf32>
    %24 = arith.maximumf %22, %23 : vector<8x128xf32>
    %c0_18 = arith.constant 0 : index
    %c0_19 = arith.constant 0 : index
    %25 = vector.load %arg8[%c0_18, %c0_19] : memref<8x128xf32, #tpu.memory_space<vmem>>, vector<8x128xf32>
    tpu.vector_store %arg8[%c0_18, %c0_19], %24 {strides = array<i32>} : memref<8x128xf32, #tpu.memory_space<vmem>>, vector<8x128xf32>,
    return
  }
  func.func @transform_0(%arg0: i32) -> (i32, i32) {
    %c0_i32 = arith.constant 0 : i32
    %c0_i32_0 = arith.constant 0 : i32
    return %arg0, %c0_i32 : i32, i32
  }
  func.func @transform_1(%arg0: i32) -> (i32, i32) {
    %c0_i32 = arith.constant 0 : i32
    %c0_i32_0 = arith.constant 0 : i32
    %c0_i32_1 = arith.constant 0 : i32
    return %c0_i32, %c0_i32_0 : i32, i32
  }
  func.func @transform_2(%arg0: i32) -> (i32, i32) {
    %c0_i32 = arith.constant 0 : i32
    %c0_i32_0 = arith.constant 0 : i32
    %c0_i32_1 = arith.constant 0 : i32
    return %c0_i32, %c0_i32_0 : i32, i32
  }
  func.func @transform_3(%arg0: i32) -> (i32, i32) {
    %c0_i32 = arith.constant 0 : i32
    %c0_i32_0 = arith.constant 0 : i32
    %c0_i32_1 = arith.constant 0 : i32
    return %c0_i32, %c0_i32_0 : i32, i32
  }
  func.func @transform_4(%arg0: i32) -> (i32, i32) {
    %c0_i32 = arith.constant 0 : i32
    %c0_i32_0 = arith.constant 0 : i32
    %c0_i32_1 = arith.constant 0 : i32
    return %c0_i32, %c0_i32_0 : i32, i32
  }
  func.func @transform_5(%arg0: i32) -> (i32, i32) {
    %c0_i32 = arith.constant 0 : i32
    %c0_i32_0 = arith.constant 0 : i32
    %c0_i32_1 = arith.constant 0 : i32
    return %c0_i32, %c0_i32_0 : i32, i32
  }
  func.func @transform_6(%arg0: i32) -> (i32, i32) {
    %c0_i32 = arith.constant 0 : i32
    %c0_i32_0 = arith.constant 0 : i32
    %c0_i32_1 = arith.constant 0 : i32
    return %c0_i32, %c0_i32_0 : i32, i32
  }
  func.func @transform_7(%arg0: i32) -> (i32, i32) {
    %c0_i32 = arith.constant 0 : i32
    %c0_i32_0 = arith.constant 0 : i32
    return %arg0, %c0_i32 : i32, i32
  }
}

</mosaic_0001>

<bundles_post_ra>
// kernel: tpu_custom_call.1
= control target key start
LH: loop header
LB: loop body
LE: loop exit
PB: predicated region body
PF: predicated region fallthrough
CT: control target
= control target key end

     0   :  { %12 = vsyncpa [#allocation3], 0  ;;  %s697_s0 = inlined_call_operand.hbm [shape: f32[8,8], index: 0, kind: input, shape index: {}]   ;;  %s698_s1 = inlined_call_operand.hbm [shape: bf16[8,128], index: 1, kind: input, shape index: {}]   ;;  %s699_s2 = inlined_call_operand.vmem [shape: f32[1,128], index: 2, kind: input, shape index: {}]   ;;  %s700_s3 = inlined_call_operand.hbm [shape: bf16[128,128], index: 3, kind: input, shape index: {}]   ;;  %s701_s4 = inlined_call_operand.vmem [shape: f32[1,128], index: 4, kind: input, shape index: {}]   ;;  %s702_s5 = inlined_call_operand.hbm [shape: bf16[128,128], index: 5, kind: input, shape index: {}]   ;;  %s703_s6 = inlined_call_operand.vmem [shape: f32[1,128], index: 6, kind: input, shape index: {}]   ;;  %s704_s7 = inlined_call_operand.hbm [shape: f32[8,128], index: 7, kind: output, shape index: {}]  }
   0x1   :  { %13 = vsyncpa [#allocation6], 0 }
   0x2   :  { %14 = vsyncpa [#allocation9], 0 }
   0x3   :  { %15 = vsyncpa [#allocation4], 0  ;;  %s601_s24 = smov [#allocation5]   ;;  %s602_s26 = smov [#allocation2]  }
   0x4   :  { %s32_s25 = sshll.u32 %s601_s24, 4  ;;  %s22_s27 = sshll.u32 %s602_s26, 4  ;;  %s33_s25 = int_to_ptr.vmem [resolvable:$true] %s32_s25  ;;  %s23_s27 = int_to_ptr.vmem [resolvable:$true] %s22_s27 }
   0x5   :  { %s501_s28 = scalar_lea.vmem %s33_s25, 64  ;;  %p506_p1 = scmp.lt.s32.totalorder %s33_s25, %s33_s25 }
   0x6   :  { %p502_p0 = scmp.ne.s32.totalorder %s33_s25, %s501_s28  ;;  %p507_p2 = scmp.lt.s32.totalorder %s501_s28, %s501_s28 }
   0x8   :  { %p508_p3 = por %p507_p2, %p506_p1 }
   0xa   :  { %p509_p4 = pnand %p508_p3, %p502_p0 }
   0xc   :  { %512 = shalt.err (!%p509_p4)
}
   0xd   :  { %35 = dma.hbm_to_vmem [thread:$0]  %s698_s1, 64, %s33_s25, [#allocation6]  }
   0xe   :  { %s521_s8 = scalar_lea.vmem %s23_s27, 128  ;;  %p526_p6 = scmp.lt.s32.totalorder %s23_s27, %s23_s27 }
   0xf   :  { %p522_p5 = scmp.ne.s32.totalorder %s23_s27, %s521_s8  ;;  %p527_p7 = scmp.lt.s32.totalorder %s521_s8, %s521_s8 }
  0x11   :  { %p528_p8 = por %p527_p7, %p526_p6 }
  0x13   :  { %p529_p9 = pnand %p528_p8, %p522_p5 }
  0x15   :  { %532 = shalt.err (!%p529_p9)
}
  0x16   :  { %25 = dma.hbm_to_vmem [thread:$0]  %s697_s0, 128, %s23_s27, [#allocation3]  }
  0x17   :  { %s603_s11 = smov [#allocation7]  }
  0x18   :  { %s43_s12 = sshll.u32 %s603_s11, 4  ;;  %s44_s12 = int_to_ptr.vmem [resolvable:$true] %s43_s12 }
  0x19   :  { %s541_s13 = scalar_lea.vmem %s44_s12, 1024  ;;  %p546_p11 = scmp.lt.s32.totalorder %s44_s12, %s44_s12 }
  0x1a   :  { %p542_p10 = scmp.ne.s32.totalorder %s44_s12, %s541_s13  ;;  %p547_p12 = scmp.lt.s32.totalorder %s541_s13, %s541_s13 }
  0x1c   :  { %p548_p13 = por %p547_p12, %p546_p11 }
  0x1e   :  { %p549_p0 = pnand %p548_p13, %p542_p10 }
  0x20   :  { %552 = shalt.err (!%p549_p0)
}
  0x21   :  { %s604_s1 = smov 64   ;;  %s605_s14 = smov 4  }
  0x22   :  { %49 = dma.hbm_to_vmem [thread:$0]  %s700_s3, 1024, %s44_s12, [#allocation6], %s604_s1, %s604_s1, %s605_s14  }
  0x23   :  { %s606_s17 = smov [#allocation8]  }
  0x24   :  { %s57_s18 = sshll.u32 %s606_s17, 4  ;;  %s58_s18 = int_to_ptr.vmem [resolvable:$true] %s57_s18 }
  0x25   :  { %s561_s0 = scalar_lea.vmem %s58_s18, 1024  ;;  %p566_p2 = scmp.lt.s32.totalorder %s58_s18, %s58_s18 }
  0x26   :  { %p562_p1 = scmp.ne.s32.totalorder %s58_s18, %s561_s0  ;;  %p567_p3 = scmp.lt.s32.totalorder %s561_s0, %s561_s0 }
  0x28   :  { %p568_p4 = por %p567_p3, %p566_p2 }
  0x2a   :  { %p569_p5 = pnand %p568_p4, %p562_p1 }
  0x2c   :  { %572 = shalt.err (!%p569_p5)
}
  0x2d   :  { %63 = dma.hbm_to_vmem [thread:$0]  %s702_s5, 1024, %s58_s18, [#allocation9], %s604_s1, %s604_s1, %s605_s14  }
  0x2e   :  { %593 = dma.done.wait [#allocation3], 128  }
  0x2f   :  { %594 = vsyncadd [#allocation3], 4294967168 }
  0x30   :  { %595 = dma.done.wait [#allocation6], 1088  }
  0x31   :  { %596 = vsyncadd [#allocation6], 4294966208 }
  0x32   :  { %597 = dma.done.wait [#allocation9], 1024  }
  0x33   :  { %598 = vsyncadd [#allocation9], 4294966272  ;;  %v607_v0 = vmov 0.0   ;;  %vm608_vm0 = vmmov 0   ;;  %vm93_vm1 = vcmask 1043456   ;;  %v79_v2 = vld [vmem:[#allocation2] sm:$0xff] }
  0x34   :  { %422 = vmatprep.subr.bf16.mxu0 %v607_v0  ;;  %424 = vmatprep.mubr.msk.bf16.mxu0 %vm608_vm0, %v607_v0  ;;  %v80_v1 = vld [vmem:[#allocation5] sm:$0xf]  ;;  %v82_v4 = vpack.c.bf16 %v79_v2, %v79_v2  ;;  %vm89_vm2 = vcmask 64512   ;;  %v478_v6 = vld [vmem:[#allocation7 + $0x30] sm:$0xff]   ;;  %v479_v7 = vld [vmem:[#allocation7 + $0x28] sm:$0xff]   ;;  %s609_s24 = smov [#allocation10]  }
  0x35   :  { %428 = vmatprep.subr.bf16.mxu1 %v607_v0  ;;  %444 = vmatprep.mubr.msk.bf16.mxu1 %vm608_vm0, %v607_v0  ;;  %v95_v3 = vsel %vm93_vm1, %v80_v1, 0  ;;  %v477_v5 = vld [vmem:[#allocation7 + $0x38] sm:$0xff]   ;;  %v480_v8 = vld [vmem:[#allocation7 + $0x20] sm:$0xff]   ;;  %v482_v10 = vld [vmem:[#allocation7 + $0x10] sm:$0xff]   ;;  %s371_s25 = sshll.u32 %s609_s24, 4  ;;  %s372_s25 = int_to_ptr.vmem [resolvable:$true] %s371_s25 }
  0x36   :  { %423 = vmatpush3.bf16.msra.mxu0 %v95_v3  ;;  %429 = vmatpush3.bf16.msra.mxu1 %v477_v5  ;;  %v481_v9 = vld [vmem:[#allocation7 + $0x18] sm:$0xff]   ;;  %v483_v11 = vld [vmem:[#allocation7 + $0x8] sm:$0xff]   ;;  %v484_v12 = vld [vmem:[#allocation7] sm:$0xff]   ;;  %p578_p7 = scmp.lt.s32.totalorder %s372_s25, %s372_s25 }
  0x37   :  { %448 = vmatprep.subr.bf16.mxu0 %v607_v0  ;;  %430 = vmatprep.subr.bf16.mxu1 %v607_v0  ;;  %v485_v13 = vld [vmem:[#allocation8 + $0x38] sm:$0xff]   ;;  %v486_v14 = vld [vmem:[#allocation8 + $0x30] sm:$0xff]   ;;  %v487_v15 = vld [vmem:[#allocation8 + $0x28] sm:$0xff]  }
  0x38   :  { %v488_v16 = vld [vmem:[#allocation8 + $0x20] sm:$0xff]   ;;  %v489_v17 = vld [vmem:[#allocation8 + $0x18] sm:$0xff]   ;;  %v490_v18 = vld [vmem:[#allocation8 + $0x10] sm:$0xff]  }
  0x39   :  { %425 = vmatmul.mubr.msk.bf16.vlgmr.msra.gmra.mxu0 %vm89_vm2, %v82_v4  ;;  %v382_v19 = vld [vmem:[%s699_s2] ss:$0 sm:$0xff]  ;;  %v491_v27 = vld [vmem:[#allocation8 + $0x8] sm:$0xff]   ;;  %v492_v28 = vld [vmem:[#allocation8] sm:$0xff]  }
  0x3a   :  { %464 = vmatprep.mubr.msk.bf16.mxu0 %vm608_vm0, %v607_v0  ;;  %431 = vmatpush3.bf16.msra.mxu1 %v478_v6  ;;  %v384_v29 = vld [vmem:[%s701_s4] ss:$0 sm:$0xff]  ;;  %s573_s4 = scalar_lea.vmem %s372_s25, 128 }
  0x3b   :  { %432 = vmatprep.subr.bf16.mxu1 %v607_v0  ;;  %449 = vmatpush3.bf16.msra.mxu0 %v485_v13  ;;  %v393_v37 = vld [vmem:[%s703_s6] ss:$0 sm:$0xff]  ;;  %p574_p6 = scmp.ne.s32.totalorder %s372_s25, %s573_s4  ;;  %p579_p8 = scmp.lt.s32.totalorder %s573_s4, %s573_s4 }
  0x3c   :  { %450 = vmatprep.subr.bf16.mxu0 %v607_v0 }
  0x3d   :  { %p580_p9 = por %p579_p8, %p578_p7 }
  0x3e   :  { %433 = vmatpush3.bf16.msra.mxu1 %v479_v7 }
  0x3f   :  { %434 = vmatprep.subr.bf16.mxu1 %v607_v0  ;;  %451 = vmatpush3.bf16.msra.mxu0 %v486_v14  ;;  %p581_p10 = pnand %p580_p9, %p574_p6 }
  0x40   :  { %452 = vmatprep.subr.bf16.mxu0 %v607_v0 }
  0x42   :  { %435 = vmatpush3.bf16.msra.mxu1 %v480_v8 }
  0x43   :  { %436 = vmatprep.subr.bf16.mxu1 %v607_v0  ;;  %453 = vmatpush3.bf16.msra.mxu0 %v487_v15 }
  0x44   :  { %454 = vmatprep.subr.bf16.mxu0 %v607_v0 }
  0x46   :  { %437 = vmatpush3.bf16.msra.mxu1 %v481_v9 }
  0x47   :  { %438 = vmatprep.subr.bf16.mxu1 %v607_v0  ;;  %455 = vmatpush3.bf16.msra.mxu0 %v488_v16 }
  0x48   :  { %456 = vmatprep.subr.bf16.mxu0 %v607_v0 }
  0x4a   :  { %439 = vmatpush3.bf16.msra.mxu1 %v482_v10 }
  0x4b   :  { %440 = vmatprep.subr.bf16.mxu1 %v607_v0  ;;  %457 = vmatpush3.bf16.msra.mxu0 %v489_v17 }
  0x4c   :  { %458 = vmatprep.subr.bf16.mxu0 %v607_v0 }
  0x4e   :  { %441 = vmatpush3.bf16.msra.mxu1 %v483_v11 }
  0x4f   :  { %442 = vmatprep.subr.bf16.mxu1 %v607_v0  ;;  %459 = vmatpush3.bf16.msra.mxu0 %v490_v18 }
  0x50   :  { %460 = vmatprep.subr.bf16.mxu0 %v607_v0 }
  0x52   :  { %443 = vmatpush3.bf16.msra.mxu1 %v484_v12 }
  0x53   :  { %461 = vmatpush3.bf16.msra.mxu0 %v491_v27 }
  0x54   :  { %462 = vmatprep.subr.bf16.mxu0 %v607_v0 }
  0x57   :  { %463 = vmatpush3.bf16.msra.mxu0 %v492_v28 }
  0xf9   :  { %v131_v20 = vpop.f32.mrf.mxu0 }
  0xfa   :  { %v132_v21 = vadd.f32 %v382_v19, %v131_v20 }
  0xfb   :  { %v426_v22 = vpop.f32.mrf.mxu0 }
  0xfc   :  { %v137_v23 = vmax.f32 %v132_v21, 0.0 }
  0xfd   :  { %v134_v24 = vpop.f32.mrf.mxu0 }
  0xfe   :  { %v155_v25 = vpack.c.bf16 %v137_v23, %v137_v23 }
  0xff   :  { %v427_v26 = vpop.f32.mrf.mxu0 }
 0x100   :  { %445 = vmatmul.mubr.bf16.vlgmr.msra.gmra.mxu1 %v155_v25 }
 0x1c0   :  { %v244_v30 = vpop.f32.mrf.mxu1 }
 0x1c1   :  { %v245_v31 = vadd.f32 %v384_v29, %v244_v30 }
 0x1c2   :  { %v446_v32 = vpop.f32.mrf.mxu1 }
 0x1c3   :  { %v250_v33 = vmax.f32 %v245_v31, 0.0 }
 0x1c4   :  { %v247_v34 = vpop.f32.mrf.mxu1 }
 0x1c5   :  { %v268_v35 = vpack.c.bf16 %v250_v33, %v250_v33 }
 0x1c6   :  { %v447_v36 = vpop.f32.mrf.mxu1 }
 0x1c7   :  { %465 = vmatmul.mubr.bf16.vlgmr.msra.gmra.mxu0 %v268_v35 }
 0x287   :  { %v357_v38 = vpop.f32.mrf.mxu0 }
 0x288   :  { %v358_v39 = vadd.f32 %v393_v37, %v357_v38 }
 0x289   :  { %v466_v40 = vpop.f32.mrf.mxu0 }
 0x28a   :  { %v363_v41 = vmax.f32 %v358_v39, 0.0 }
 0x28b   :  { %v360_v42 = vpop.f32.mrf.mxu0 }
 0x28c   :  { %364 = vst [vmem:[#allocation10] sm:$0xff] %v363_v41 }
 0x28d   :  { %v467_v43 = vpop.f32.mrf.mxu0 }
 0x28e   :  { %584 = shalt.err (!%p581_p10)
}
 0x28f   :  { %374 = dma.vmem_to_hbm [thread:$0]  %s372_s25, 128, %s704_s7, [#allocation4]  }
 0x290   :  { %599 = dma.done.wait [#allocation4], 128  }
 0x291   :  { %600 = vsyncadd [#allocation4], 4294967168 }
 0x292   :  { %378 = vsyncpa [#allocation3], 1 }
 0x293   :  { %379 = vsyncpa [#allocation6], 1 }
 0x294   :  { %380 = vsyncpa [#allocation9], 1 }
 0x295   :  { %381 = vsyncpa [#allocation4], 1 }

// kernel: tpu_custom_call.1
= control target key start
LH: loop header
LB: loop body
LE: loop exit
PB: predicated region body
PF: predicated region fallthrough
CT: control target
= control target key end

     0   :  { %12 = vsyncpa [#allocation3], 0  ;;  %s697_s0 = inlined_call_operand.hbm [shape: f32[8,8], index: 0, kind: input, shape index: {}]   ;;  %s698_s1 = inlined_call_operand.hbm [shape: bf16[8,128], index: 1, kind: input, shape index: {}]   ;;  %s699_s2 = inlined_call_operand.vmem [shape: f32[1,128], index: 2, kind: input, shape index: {}]   ;;  %s700_s3 = inlined_call_operand.hbm [shape: bf16[128,128], index: 3, kind: input, shape index: {}]   ;;  %s701_s4 = inlined_call_operand.vmem [shape: f32[1,128], index: 4, kind: input, shape index: {}]   ;;  %s702_s5 = inlined_call_operand.hbm [shape: bf16[128,128], index: 5, kind: input, shape index: {}]   ;;  %s703_s6 = inlined_call_operand.vmem [shape: f32[1,128], index: 6, kind: input, shape index: {}]   ;;  %s704_s7 = inlined_call_operand.hbm [shape: f32[8,128], index: 7, kind: output, shape index: {}]  }
   0x1   :  { %13 = vsyncpa [#allocation6], 0 }
   0x2   :  { %14 = vsyncpa [#allocation9], 0 }
   0x3   :  { %15 = vsyncpa [#allocation4], 0  ;;  %s601_s24 = smov [#allocation5]   ;;  %s602_s26 = smov [#allocation2]  }
   0x4   :  { %s32_s25 = sshll.u32 %s601_s24, 4  ;;  %s22_s27 = sshll.u32 %s602_s26, 4  ;;  %s33_s25 = int_to_ptr.vmem [resolvable:$true] %s32_s25  ;;  %s23_s27 = int_to_ptr.vmem [resolvable:$true] %s22_s27 }
   0x5   :  { %s501_s28 = scalar_lea.vmem %s33_s25, 64  ;;  %p506_p1 = scmp.lt.s32.totalorder %s33_s25, %s33_s25 }
   0x6   :  { %p502_p0 = scmp.ne.s32.totalorder %s33_s25, %s501_s28  ;;  %p507_p2 = scmp.lt.s32.totalorder %s501_s28, %s501_s28 }
   0x8   :  { %p508_p3 = por %p507_p2, %p506_p1 }
   0xa   :  { %p509_p4 = pnand %p508_p3, %p502_p0 }
   0xc   :  { %512 = shalt.err (!%p509_p4)
}
   0xd   :  { %35 = dma.hbm_to_vmem [thread:$0]  %s698_s1, 64, %s33_s25, [#allocation6]  }
   0xe   :  { %s521_s8 = scalar_lea.vmem %s23_s27, 128  ;;  %p526_p6 = scmp.lt.s32.totalorder %s23_s27, %s23_s27 }
   0xf   :  { %p522_p5 = scmp.ne.s32.totalorder %s23_s27, %s521_s8  ;;  %p527_p7 = scmp.lt.s32.totalorder %s521_s8, %s521_s8 }
  0x11   :  { %p528_p8 = por %p527_p7, %p526_p6 }
  0x13   :  { %p529_p9 = pnand %p528_p8, %p522_p5 }
  0x15   :  { %532 = shalt.err (!%p529_p9)
}
  0x16   :  { %25 = dma.hbm_to_vmem [thread:$0]  %s697_s0, 128, %s23_s27, [#allocation3]  }
  0x17   :  { %s603_s11 = smov [#allocation7]  }
  0x18   :  { %s43_s12 = sshll.u32 %s603_s11, 4  ;;  %s44_s12 = int_to_ptr.vmem [resolvable:$true] %s43_s12 }
  0x19   :  { %s541_s13 = scalar_lea.vmem %s44_s12, 1024  ;;  %p546_p11 = scmp.lt.s32.totalorder %s44_s12, %s44_s12 }
  0x1a   :  { %p542_p10 = scmp.ne.s32.totalorder %s44_s12, %s541_s13  ;;  %p547_p12 = scmp.lt.s32.totalorder %s541_s13, %s541_s13 }
  0x1c   :  { %p548_p13 = por %p547_p12, %p546_p11 }
  0x1e   :  { %p549_p0 = pnand %p548_p13, %p542_p10 }
  0x20   :  { %552 = shalt.err (!%p549_p0)
}
  0x21   :  { %s604_s1 = smov 64   ;;  %s605_s14 = smov 4  }
  0x22   :  { %49 = dma.hbm_to_vmem [thread:$0]  %s700_s3, 1024, %s44_s12, [#allocation6], %s604_s1, %s604_s1, %s605_s14  }
  0x23   :  { %s606_s17 = smov [#allocation8]  }
  0x24   :  { %s57_s18 = sshll.u32 %s606_s17, 4  ;;  %s58_s18 = int_to_ptr.vmem [resolvable:$true] %s57_s18 }
  0x25   :  { %s561_s0 = scalar_lea.vmem %s58_s18, 1024  ;;  %p566_p2 = scmp.lt.s32.totalorder %s58_s18, %s58_s18 }
  0x26   :  { %p562_p1 = scmp.ne.s32.totalorder %s58_s18, %s561_s0  ;;  %p567_p3 = scmp.lt.s32.totalorder %s561_s0, %s561_s0 }
  0x28   :  { %p568_p4 = por %p567_p3, %p566_p2 }
  0x2a   :  { %p569_p5 = pnand %p568_p4, %p562_p1 }
  0x2c   :  { %572 = shalt.err (!%p569_p5)
}
  0x2d   :  { %63 = dma.hbm_to_vmem [thread:$0]  %s702_s5, 1024, %s58_s18, [#allocation9], %s604_s1, %s604_s1, %s605_s14  }
  0x2e   :  { %593 = dma.done.wait [#allocation3], 128  }
  0x2f   :  { %594 = vsyncadd [#allocation3], 4294967168 }
  0x30   :  { %595 = dma.done.wait [#allocation6], 1088  }
  0x31   :  { %596 = vsyncadd [#allocation6], 4294966208 }
  0x32   :  { %597 = dma.done.wait [#allocation9], 1024  }
  0x33   :  { %598 = vsyncadd [#allocation9], 4294966272  ;;  %v607_v0 = vmov 0.0   ;;  %vm608_vm0 = vmmov 0   ;;  %vm93_vm1 = vcmask 1043456   ;;  %v79_v2 = vld [vmem:[#allocation2] sm:$0xff] }
  0x34   :  { %422 = vmatprep.subr.bf16.mxu0 %v607_v0  ;;  %424 = vmatprep.mubr.msk.bf16.mxu0 %vm608_vm0, %v607_v0  ;;  %v80_v1 = vld [vmem:[#allocation5] sm:$0xf]  ;;  %v82_v4 = vpack.c.bf16 %v79_v2, %v79_v2  ;;  %vm89_vm2 = vcmask 64512   ;;  %v478_v6 = vld [vmem:[#allocation7 + $0x30] sm:$0xff]   ;;  %v479_v7 = vld [vmem:[#allocation7 + $0x28] sm:$0xff]   ;;  %s609_s24 = smov [#allocation10]  }
  0x35   :  { %428 = vmatprep.subr.bf16.mxu1 %v607_v0  ;;  %444 = vmatprep.mubr.msk.bf16.mxu1 %vm608_vm0, %v607_v0  ;;  %v95_v3 = vsel %vm93_vm1, %v80_v1, 0  ;;  %v477_v5 = vld [vmem:[#allocation7 + $0x38] sm:$0xff]   ;;  %v480_v8 = vld [vmem:[#allocation7 + $0x20] sm:$0xff]   ;;  %v482_v10 = vld [vmem:[#allocation7 + $0x10] sm:$0xff]   ;;  %s371_s25 = sshll.u32 %s609_s24, 4  ;;  %s372_s25 = int_to_ptr.vmem [resolvable:$true] %s371_s25 }
  0x36   :  { %423 = vmatpush3.bf16.msra.mxu0 %v95_v3  ;;  %429 = vmatpush3.bf16.msra.mxu1 %v477_v5  ;;  %v481_v9 = vld [vmem:[#allocation7 + $0x18] sm:$0xff]   ;;  %v483_v11 = vld [vmem:[#allocation7 + $0x8] sm:$0xff]   ;;  %v484_v12 = vld [vmem:[#allocation7] sm:$0xff]   ;;  %p578_p7 = scmp.lt.s32.totalorder %s372_s25, %s372_s25 }
  0x37   :  { %448 = vmatprep.subr.bf16.mxu0 %v607_v0  ;;  %430 = vmatprep.subr.bf16.mxu1 %v607_v0  ;;  %v485_v13 = vld [vmem:[#allocation8 + $0x38] sm:$0xff]   ;;  %v486_v14 = vld [vmem:[#allocation8 + $0x30] sm:$0xff]   ;;  %v487_v15 = vld [vmem:[#allocation8 + $0x28] sm:$0xff]  }
  0x38   :  { %v488_v16 = vld [vmem:[#allocation8 + $0x20] sm:$0xff]   ;;  %v489_v17 = vld [vmem:[#allocation8 + $0x18] sm:$0xff]   ;;  %v490_v18 = vld [vmem:[#allocation8 + $0x10] sm:$0xff]  }
  0x39   :  { %425 = vmatmul.mubr.msk.bf16.vlgmr.msra.gmra.mxu0 %vm89_vm2, %v82_v4  ;;  %v382_v19 = vld [vmem:[%s699_s2] ss:$0 sm:$0xff]  ;;  %v491_v27 = vld [vmem:[#allocation8 + $0x8] sm:$0xff]   ;;  %v492_v28 = vld [vmem:[#allocation8] sm:$0xff]  }
  0x3a   :  { %464 = vmatprep.mubr.msk.bf16.mxu0 %vm608_vm0, %v607_v0  ;;  %431 = vmatpush3.bf16.msra.mxu1 %v478_v6  ;;  %v384_v29 = vld [vmem:[%s701_s4] ss:$0 sm:$0xff]  ;;  %s573_s4 = scalar_lea.vmem %s372_s25, 128 }
  0x3b   :  { %432 = vmatprep.subr.bf16.mxu1 %v607_v0  ;;  %449 = vmatpush3.bf16.msra.mxu0 %v485_v13  ;;  %v393_v37 = vld [vmem:[%s703_s6] ss:$0 sm:$0xff]  ;;  %p574_p6 = scmp.ne.s32.totalorder %s372_s25, %s573_s4  ;;  %p579_p8 = scmp.lt.s32.totalorder %s573_s4, %s573_s4 }
  0x3c   :  { %450 = vmatprep.subr.bf16.mxu0 %v607_v0 }
  0x3d   :  { %p580_p9 = por %p579_p8, %p578_p7 }
  0x3e   :  { %433 = vmatpush3.bf16.msra.mxu1 %v479_v7 }
  0x3f   :  { %434 = vmatprep.subr.bf16.mxu1 %v607_v0  ;;  %451 = vmatpush3.bf16.msra.mxu0 %v486_v14  ;;  %p581_p10 = pnand %p580_p9, %p574_p6 }
  0x40   :  { %452 = vmatprep.subr.bf16.mxu0 %v607_v0 }
  0x42   :  { %435 = vmatpush3.bf16.msra.mxu1 %v480_v8 }
  0x43   :  { %436 = vmatprep.subr.bf16.mxu1 %v607_v0  ;;  %453 = vmatpush3.bf16.msra.mxu0 %v487_v15 }
  0x44   :  { %454 = vmatprep.subr.bf16.mxu0 %v607_v0 }
  0x46   :  { %437 = vmatpush3.bf16.msra.mxu1 %v481_v9 }
  0x47   :  { %438 = vmatprep.subr.bf16.mxu1 %v607_v0  ;;  %455 = vmatpush3.bf16.msra.mxu0 %v488_v16 }
  0x48   :  { %456 = vmatprep.subr.bf16.mxu0 %v607_v0 }
  0x4a   :  { %439 = vmatpush3.bf16.msra.mxu1 %v482_v10 }
  0x4b   :  { %440 = vmatprep.subr.bf16.mxu1 %v607_v0  ;;  %457 = vmatpush3.bf16.msra.mxu0 %v489_v17 }
  0x4c   :  { %458 = vmatprep.subr.bf16.mxu0 %v607_v0 }
  0x4e   :  { %441 = vmatpush3.bf16.msra.mxu1 %v483_v11 }
  0x4f   :  { %442 = vmatprep.subr.bf16.mxu1 %v607_v0  ;;  %459 = vmatpush3.bf16.msra.mxu0 %v490_v18 }
  0x50   :  { %460 = vmatprep.subr.bf16.mxu0 %v607_v0 }
  0x52   :  { %443 = vmatpush3.bf16.msra.mxu1 %v484_v12 }
  0x53   :  { %461 = vmatpush3.bf16.msra.mxu0 %v491_v27 }
  0x54   :  { %462 = vmatprep.subr.bf16.mxu0 %v607_v0 }
  0x57   :  { %463 = vmatpush3.bf16.msra.mxu0 %v492_v28 }
  0xf9   :  { %v131_v20 = vpop.f32.mrf.mxu0 }
  0xfa   :  { %v132_v21 = vadd.f32 %v382_v19, %v131_v20 }
  0xfb   :  { %v426_v22 = vpop.f32.mrf.mxu0 }
  0xfc   :  { %v137_v23 = vmax.f32 %v132_v21, 0.0 }
  0xfd   :  { %v134_v24 = vpop.f32.mrf.mxu0 }
  0xfe   :  { %v155_v25 = vpack.c.bf16 %v137_v23, %v137_v23 }
  0xff   :  { %v427_v26 = vpop.f32.mrf.mxu0 }
 0x100   :  { %445 = vmatmul.mubr.bf16.vlgmr.msra.gmra.mxu1 %v155_v25 }
 0x1c0   :  { %v244_v30 = vpop.f32.mrf.mxu1 }
 0x1c1   :  { %v245_v31 = vadd.f32 %v384_v29, %v244_v30 }
 0x1c2   :  { %v446_v32 = vpop.f32.mrf.mxu1 }
 0x1c3   :  { %v250_v33 = vmax.f32 %v245_v31, 0.0 }
 0x1c4   :  { %v247_v34 = vpop.f32.mrf.mxu1 }
 0x1c5   :  { %v268_v35 = vpack.c.bf16 %v250_v33, %v250_v33 }
 0x1c6   :  { %v447_v36 = vpop.f32.mrf.mxu1 }
 0x1c7   :  { %465 = vmatmul.mubr.bf16.vlgmr.msra.gmra.mxu0 %v268_v35 }
 0x287   :  { %v357_v38 = vpop.f32.mrf.mxu0 }
 0x288   :  { %v358_v39 = vadd.f32 %v393_v37, %v357_v38 }
 0x289   :  { %v466_v40 = vpop.f32.mrf.mxu0 }
 0x28a   :  { %v363_v41 = vmax.f32 %v358_v39, 0.0 }
 0x28b   :  { %v360_v42 = vpop.f32.mrf.mxu0 }
 0x28c   :  { %364 = vst [vmem:[#allocation10] sm:$0xff] %v363_v41 }
 0x28d   :  { %v467_v43 = vpop.f32.mrf.mxu0 }
 0x28e   :  { %584 = shalt.err (!%p581_p10)
}
 0x28f   :  { %374 = dma.vmem_to_hbm [thread:$0]  %s372_s25, 128, %s704_s7, [#allocation4]  }
 0x290   :  { %599 = dma.done.wait [#allocation4], 128  }
 0x291   :  { %600 = vsyncadd [#allocation4], 4294967168 }
 0x292   :  { %378 = vsyncpa [#allocation3], 1 }
 0x293   :  { %379 = vsyncpa [#allocation6], 1 }
 0x294   :  { %380 = vsyncpa [#allocation9], 1 }
 0x295   :  { %381 = vsyncpa [#allocation4], 1 }

</bundles_post_ra>
